<compile_context>
chip_gen: v7x
topology: tpu7x:2x2x1
jax: 0.10.0
libtpu: 0.0.40
codegen_flags: <defaults>
</compile_context>

<pallas_src>
import math

import jax
import jax.numpy as jnp
from jax import lax
from jax.experimental import pallas as pl
from jax.experimental.pallas import tpu as pltpu


def _grouped_linear_kernel(x_ref, w_ref, o_ref):
    # x_ref: (TM, G_BLK*GCI), w_ref: (G_BLK, GCI, GCO), o_ref: (TM, G_BLK*GCO)
    g_blk, gci, gco = w_ref.shape

    if g_blk <= 8:
        # Small block: static unroll, static (zero-cost) slices.
        for g in range(g_blk):
            xg = x_ref[:, g * gci:(g + 1) * gci]
            yg = jnp.dot(xg, w_ref[g], preferred_element_type=jnp.float32)
            o_ref[:, g * gco:(g + 1) * gco] = yg.astype(o_ref.dtype)
    else:
        # Many groups per block: fori_loop keeps live ranges tight (no vreg
        # spills); pl.multiple_of keeps the dynamic slices 128-lane aligned
        # (GCI/GCO are multiples of 128 on this path).
        def body(g, carry):
            x_start = pl.multiple_of(g * gci, 128)
            o_start = pl.multiple_of(g * gco, 128)
            xg = x_ref[:, pl.ds(x_start, gci)]
            yg = jnp.dot(xg, w_ref[g], preferred_element_type=jnp.float32)
            o_ref[:, pl.ds(o_start, gco)] = yg.astype(o_ref.dtype)
            return carry

        lax.fori_loop(0, g_blk, body, 0)


def _vmem_capacity_bytes():
    try:
        return int(pltpu.get_tpu_info().vmem_capacity_bytes)
    except Exception:
        return 64 * 2**20  # conservative (v7x-sized) fallback


def _divisors_desc(n):
    return [d for d in range(n, 0, -1) if n % d == 0]


def _pick_tiles(B, NG, GCI, GCO, x_itemsize, w_itemsize, budget_bytes):
    """Largest (tm, g_blk) whose double-buffered block set fits the budget.

    Keeps the batch tile >= 128 rows where possible (MXU-filling dots) and
    shrinks the per-step group count before the batch tile when tight.
    """
    if B % 8 == 0:
        tm_cands = [d for d in _divisors_desc(B) if d % 8 == 0 and d <= 512]
    else:
        tm_cands = [B]  # full-extent batch block is always a legal block shape
    g_cands = _divisors_desc(NG)

    def fits(tm, g):
        x_b = tm * g * GCI * x_itemsize
        o_b = tm * g * GCO * x_itemsize
        w_b = g * GCI * GCO * w_itemsize
        return 2 * (x_b + o_b + w_b) <= budget_bytes  # double-buffered set

    preferred = [t for t in tm_cands if t >= 128] or tm_cands
    for tm in preferred:           # biggest batch tile (>=128 rows) first
        for g in g_cands:          # then the biggest group block that fits
            if fits(tm, g):
                return tm, g
    for tm in tm_cands:            # budget very tight: small tm as last resort
        if fits(tm, 1):
            return tm, 1
    return None                    # nothing fits -> caller uses dense path


def _dense_reference(x, weight):
    B = x.shape[0]
    NG, GCI, GCO = weight.shape
    return jnp.einsum("bgi,gio->bgo", x.reshape(B, NG, GCI), weight).reshape(
        B, NG * GCO)


def grouped_linear(x, weight, *, vmem_budget_bytes=None):
    """x: (B, NG*GCI); weight: (NG, GCI, GCO). Returns (B, NG*GCO)."""
    B, C = x.shape
    NG, GCI, GCO = weight.shape
    assert C == NG * GCI
    out_features = NG * GCO

    # Narrow groups: the Pallas path would run K=8-ish dots (<10% MXU) and
    # cross (8,128) tile boundaries when slicing; a grouped einsum is faster.
    if GCI % 128 != 0 or GCO % 128 != 0:
        return _dense_reference(x, weight)

    x_itemsize = jnp.dtype(x.dtype).itemsize
    w_itemsize = jnp.dtype(weight.dtype).itemsize

    vmem_cap = _vmem_capacity_bytes()
    budget = (vmem_budget_bytes if vmem_budget_bytes is not None
              else int(0.7 * vmem_cap))

    tiles = _pick_tiles(B, NG, GCI, GCO, x_itemsize, w_itemsize, budget)
    if tiles is None:
        return _dense_reference(x, weight)
    tm, g_blk = tiles

    n_bb = B // tm
    n_gb = NG // g_blk

    if n_gb >= 2:
        # Weight-stationary: group block outer, batch inner -> the weight
        # block index is invariant along the inner axis, so each weight block
        # is fetched from HBM exactly once per launch.
        grid = (n_gb, n_bb)
        x_spec = pl.BlockSpec((tm, g_blk * GCI), lambda g, i: (i, g))
        w_spec = pl.BlockSpec((g_blk, GCI, GCO), lambda g, i: (g, 0, 0))
        o_spec = pl.BlockSpec((tm, g_blk * GCO), lambda g, i: (i, g))
    else:
        # All groups in one block: weight is trivially stationary; put batch
        # first so the leading "parallel" axis has extent >= 2 (v7x megacore).
        grid = (n_bb, n_gb)
        x_spec = pl.BlockSpec((tm, g_blk * GCI), lambda i, g: (i, g))
        w_spec = pl.BlockSpec((g_blk, GCI, GCO), lambda i, g: (g, 0, 0))
        o_spec = pl.BlockSpec((tm, g_blk * GCO), lambda i, g: (i, g))

    x_blk = tm * g_blk * GCI * x_itemsize
    o_blk = tm * g_blk * GCO * x_itemsize
    w_blk = g_blk * GCI * GCO * w_itemsize
    needed = 2 * (x_blk + o_blk + w_blk)            # double-buffered block set
    vmem_limit = int(min(vmem_cap - (4 << 20),      # headroom for compiler use
                         max(needed + needed // 4, 32 << 20)))
    vmem_limit = max(vmem_limit, needed + (2 << 20))

    cost = pl.CostEstimate(
        flops=2 * B * NG * GCI * GCO,
        transcendentals=0,
        bytes_accessed=(x.size * x_itemsize
                        + weight.size * w_itemsize   # read once (stationary)
                        + B * out_features * x_itemsize),
    )

    return pl.pallas_call(
        _grouped_linear_kernel,
        out_shape=jax.ShapeDtypeStruct((B, out_features), x.dtype),
        grid_spec=pltpu.PrefetchScalarGridSpec(
            num_scalar_prefetch=0,
            grid=grid,
            in_specs=[x_spec, w_spec],
            out_specs=o_spec,
        ),
        compiler_params=pltpu.CompilerParams(
            dimension_semantics=("parallel", "parallel"),
            vmem_limit_bytes=vmem_limit,
        ),
        cost_estimate=cost,
    )(x, weight)


def init_params(key, in_features, out_features, num_groups, bias=True):
    NG = num_groups
    GCI = in_features // num_groups
    GCO = out_features // num_groups
    stdv = 1.0 / math.sqrt(GCO)  # weight.size(-1) == GCO
    kw, kb = jax.random.split(key)
    weight = jax.random.uniform(
        kw, (NG, GCI, GCO), dtype=jnp.float32, minval=-stdv, maxval=stdv)
    b = None
    if bias:
        # Initialized to mirror __init__, but unused in forward (as in PyTorch).
        b = jax.random.uniform(
            kb, (NG, GCO), dtype=jnp.float32, minval=-stdv, maxval=stdv)
    return weight, b


if __name__ == "__main__":
    key = jax.random.PRNGKey(0)
    keys = jax.random.split(key, 6)

    # Config 1: the module's toy shapes (GCI=8, GCO=16) -> dense fallback path
    # (narrow groups are intentionally routed around Pallas).
    B, in_f, out_f, ng = 8, 32, 64, 4
    x = jax.random.normal(keys[0], (B, in_f), dtype=jnp.float32)
    w, bias = init_params(keys[1], in_f, out_f, ng)
    out = jax.block_until_ready(grouped_linear(x, w))
    assert out.shape == (B, out_f)
    assert jnp.allclose(out, _dense_reference(x, w), atol=1e-5, rtol=1e-5)

    # Config 2: Pallas path, all groups in one lane-dense block.
    B2, in2, out2, ng2 = 256, 256, 256, 2
    x2 = jax.random.normal(keys[2], (B2, in2), dtype=jnp.float32)
    w2, _ = init_params(keys[3], in2, out2, ng2, bias=False)
    o2 = jax.block_until_ready(grouped_linear(x2, w2))
    assert jnp.allclose(o2, _dense_reference(x2, w2), atol=1e-4, rtol=1e-4)

    # Config 3: Pallas path with a multi-step batch grid (tm=320, two blocks).
    B3, in3, out3, ng3 = 640, 512, 512, 4
    x3 = jax.random.normal(keys[4], (B3, in3), dtype=jnp.float32)
    w3, _ = init_params(keys[5], in3, out3, ng3, bias=False)
    o3 = jax.block_until_ready(grouped_linear(x3, w3))
    assert jnp.allclose(o3, _dense_reference(x3, w3), atol=1e-4, rtol=1e-4)

    # Config 4: tiny VMEM budget override -> multiple group blocks, exercising
    # the weight-stationary (group-outer / batch-inner) grid ordering.
    o4 = jax.block_until_ready(
        grouped_linear(x3, w3, vmem_budget_bytes=2 * 2**20))
    assert jnp.allclose(o4, _dense_reference(x3, w3), atol=1e-4, rtol=1e-4)

    print("KERNEL_OK")
</pallas_src>

<mosaic_0001>
module attributes {stable_mosaic.version = 11 : i64} {
  func.func @_grouped_linear_kernel(%arg0: i32, %arg1: i32, %arg2: memref<256x256xf32, #tpu.memory_space<vmem>>, %arg3: memref<2x128x128xf32, #tpu.memory_space<vmem>>, %arg4: memref<256x256xf32, #tpu.memory_space<vmem>>) attributes {dimension_semantics = [#tpu.dimension_semantics<parallel>, #tpu.dimension_semantics<parallel>], iteration_bounds = array<i64: 1, 1>, scalar_prefetch = 0 : i64, scratch_operands = 0 : i64, tpu.core_type = #tpu.core_type<tc>, window_params = [{transform_indices = @transform_0, window_bounds = array<i64: 256, 256>}, {transform_indices = @transform_1, window_bounds = array<i64: 2, 128, 128>}, {transform_indices = @transform_2, window_bounds = array<i64: 256, 256>}]} {
    %c0 = arith.constant 0 : index
    %c0_0 = arith.constant 0 : index
    %0 = vector.load %arg2[%c0, %c0_0] : memref<256x256xf32, #tpu.memory_space<vmem>>, vector<256x128xf32>
    %c0_1 = arith.constant 0 : index
    %c0_2 = arith.constant 0 : index
    %c0_3 = arith.constant 0 : index
    %1 = vector.load %arg3[%c0_1, %c0_2, %c0_3] : memref<2x128x128xf32, #tpu.memory_space<vmem>>, vector<1x128x128xf32>
    %2 = vector.shape_cast %1 : vector<1x128x128xf32> to vector<128x128xf32>
    %cst = arith.constant dense<0.000000e+00> : vector<256x128xf32>
    %3 = tpu.matmul %0, %2, %cst {dimension_numbers = #tpu.dot_dimension_numbers<[1], [0], [0], [1], [0, 0, 1, 1], [], []>} : vector<256x128xf32>, vector<128x128xf32>, vector<256x128xf32> -> vector<256x128xf32>
    %c0_4 = arith.constant 0 : index
    %c0_5 = arith.constant 0 : index
    %4 = vector.load %arg4[%c0_4, %c0_5] : memref<256x256xf32, #tpu.memory_space<vmem>>, vector<256x128xf32>
    tpu.vector_store %arg4[%c0_4, %c0_5], %3 {strides = array<i32>} : memref<256x256xf32, #tpu.memory_space<vmem>>, vector<256x128xf32>,
    %c0_6 = arith.constant 0 : index
    %c128 = arith.constant 128 : index
    %5 = vector.load %arg2[%c0_6, %c128] : memref<256x256xf32, #tpu.memory_space<vmem>>, vector<256x128xf32>
    %c1 = arith.constant 1 : index
    %c0_7 = arith.constant 0 : index
    %c0_8 = arith.constant 0 : index
    %6 = vector.load %arg3[%c1, %c0_7, %c0_8] : memref<2x128x128xf32, #tpu.memory_space<vmem>>, vector<1x128x128xf32>
    %7 = vector.shape_cast %6 : vector<1x128x128xf32> to vector<128x128xf32>
    %cst_9 = arith.constant dense<0.000000e+00> : vector<256x128xf32>
    %8 = tpu.matmul %5, %7, %cst_9 {dimension_numbers = #tpu.dot_dimension_numbers<[1], [0], [0], [1], [0, 0, 1, 1], [], []>} : vector<256x128xf32>, vector<128x128xf32>, vector<256x128xf32> -> vector<256x128xf32>
    %c0_10 = arith.constant 0 : index
    %c128_11 = arith.constant 128 : index
    %9 = vector.load %arg4[%c0_10, %c128_11] : memref<256x256xf32, #tpu.memory_space<vmem>>, vector<256x128xf32>
    tpu.vector_store %arg4[%c0_10, %c128_11], %8 {strides = array<i32>} : memref<256x256xf32, #tpu.memory_space<vmem>>, vector<256x128xf32>,
    return
  }
  func.func @transform_0(%arg0: i32, %arg1: i32) -> (i32, i32) {
    %c0_i32 = arith.constant 0 : i32
    return %arg0, %arg1 : i32, i32
  }
  func.func @transform_1(%arg0: i32, %arg1: i32) -> (i32, i32, i32) {
    %c0_i32 = arith.constant 0 : i32
    %c0_i32_0 = arith.constant 0 : i32
    %c0_i32_1 = arith.constant 0 : i32
    return %arg1, %c0_i32, %c0_i32_0 : i32, i32, i32
  }
  func.func @transform_2(%arg0: i32, %arg1: i32) -> (i32, i32) {
    %c0_i32 = arith.constant 0 : i32
    return %arg0, %arg1 : i32, i32
  }
}

</mosaic_0001>

<bundles_post_ra>
// kernel: tpu_custom_call.1
= control target key start
LH: loop header
LB: loop body
LE: loop exit
PB: predicated region body
PF: predicated region fallthrough
CT: control target
= control target key end

     0   :  { %7 = vsyncpa [#allocation3], 0  ;;  %s1132_s0 = inlined_call_operand.hbm [shape: f32[256,256], index: 0, kind: input, shape index: {}]   ;;  %s1133_s1 = inlined_call_operand.hbm [shape: f32[2,128,128], index: 1, kind: input, shape index: {}]   ;;  %s1134_s2 = inlined_call_operand.hbm [shape: f32[256,256], index: 2, kind: output, shape index: {}]  }
   0x1   :  { %8 = vsyncpa [#allocation6], 0 }
   0x2   :  { %9 = vsyncpa [#allocation4], 0  ;;  %s1068_s9 = smov [#allocation2]   ;;  %s996_s13 = scalar_lea.hbm %s1132_s0, 8192 }
   0x3   :  { %s15_s10 = sshll.u32 %s1068_s9, 4  ;;  %p997_p0 = scmp.ne.s32.totalorder %s1132_s0, %s996_s13  ;;  %s16_s10 = int_to_ptr.vmem [resolvable:$true] %s15_s10 }
   0x4   :  { %p1000_p1 = scmp.lt.u32.totalorder %s996_s13, %s1132_s0 }
   0x6   :  { %p1002_p2 = pnand %p1000_p1, %p997_p0 }
   0x8   :  { %1005 = shalt.err (!%p1002_p2)
}
   0x9   :  { %s1006_s18 = scalar_lea.vmem %s16_s10, 8192  ;;  %p1011_p4 = scmp.lt.s32.totalorder %s16_s10, %s16_s10 }
   0xa   :  { %p1007_p3 = scmp.ne.s32.totalorder %s16_s10, %s1006_s18  ;;  %p1012_p5 = scmp.lt.s32.totalorder %s1006_s18, %s1006_s18 }
   0xc   :  { %p1013_p6 = por %p1012_p5, %p1011_p4 }
   0xe   :  { %p1014_p7 = pnand %p1013_p6, %p1007_p3 }
  0x10   :  { %1017 = shalt.err (!%p1014_p7)
}
  0x11   :  { %s1069_s19 = smov 256   ;;  %s1070_s20 = smov 16  }
  0x12   :  { %21 = dma.hbm_to_vmem [thread:$0]  %s1132_s0, 8192, %s16_s10, [#allocation3], %s1069_s19, %s1069_s19, %s1070_s20  }
  0x13   :  { %s1071_s23 = smov [#allocation5]   ;;  %s1018_s27 = scalar_lea.hbm %s1133_s1, 4096 }
  0x14   :  { %s27_s24 = sshll.u32 %s1071_s23, 4  ;;  %p1019_p8 = scmp.ne.s32.totalorder %s1133_s1, %s1018_s27  ;;  %s28_s24 = int_to_ptr.vmem [resolvable:$true] %s27_s24 }
  0x15   :  { %p1022_p9 = scmp.lt.u32.totalorder %s1018_s27, %s1133_s1 }
  0x17   :  { %p1024_p10 = pnand %p1022_p9, %p1019_p8 }
  0x19   :  { %1027 = shalt.err (!%p1024_p10)
}
  0x1a   :  { %s1028_s4 = scalar_lea.vmem %s28_s24, 4096  ;;  %p1033_p12 = scmp.lt.s32.totalorder %s28_s24, %s28_s24 }
  0x1b   :  { %p1029_p11 = scmp.ne.s32.totalorder %s28_s24, %s1028_s4  ;;  %p1034_p13 = scmp.lt.s32.totalorder %s1028_s4, %s1028_s4 }
  0x1d   :  { %p1035_p0 = por %p1034_p13, %p1033_p12 }
  0x1f   :  { %p1036_p1 = pnand %p1035_p0, %p1029_p11 }
  0x21   :  { %1039 = shalt.err (!%p1036_p1)
}
  0x22   :  { %s1072_s0 = smov 128   ;;  %s1073_s5 = smov 8  }
  0x23   :  { %33 = dma.hbm_to_vmem [thread:$0]  %s1133_s1, 4096, %s28_s24, [#allocation6], %s1072_s0, %s1072_s0, %s1073_s5  }
  0x24   :  { %1062 = dma.done.wait [#allocation3], 8192  }
  0x25   :  { %1063 = vsyncadd [#allocation3], 4294959104 }
  0x26   :  { %1064 = dma.done.wait [#allocation6], 4096  }
  0x27   :  { %1065 = vsyncadd [#allocation6], 4294963200  ;;  %v72_v0 = vld [vmem:[#allocation5] sm:$0xff]  ;;  %v73_v1 = vld [vmem:[#allocation5 + $0x8] sm:$0xff]  ;;  %s1074_s1 = smov [#allocation7]  }
  0x28   :  { %v378_v2 = vld [vmem:[#allocation5 + $0x80] sm:$0xff]  ;;  %v925_v3 = vpack.c.bf16 %v73_v1, %v72_v0  ;;  %v379_v4 = vld [vmem:[#allocation5 + $0x88] sm:$0xff]  ;;  %v74_v5 = vld [vmem:[#allocation5 + $0x10] sm:$0xff]  ;;  %s656_s8 = sshll.u32 %s1074_s1, 4  ;;  %s657_s8 = int_to_ptr.vmem [resolvable:$true] %s656_s8 }
  0x29   :  { %v75_v6 = vld [vmem:[#allocation5 + $0x18] sm:$0xff]  ;;  %v957_v7 = vpack.c.bf16 %v379_v4, %v378_v2  ;;  %v380_v9 = vld [vmem:[#allocation5 + $0x90] sm:$0xff]  ;;  %v76_v11 = vld [vmem:[#allocation5 + $0x20] sm:$0xff]  ;;  %s1040_s9 = scalar_lea.vmem %s657_s8, 8192  ;;  %p1045_p3 = scmp.lt.s32.totalorder %s657_s8, %s657_s8 }
  0x2a   :  { %v929_v8 = vpack.c.bf16 %v75_v6, %v74_v5  ;;  %v381_v10 = vld [vmem:[#allocation5 + $0x98] sm:$0xff]  ;;  %926 = vmatprep.subr.bf16.mxu0 %v925_v3  ;;  %v77_v13 = vld [vmem:[#allocation5 + $0x28] sm:$0xff]  ;;  %v382_v14 = vld [vmem:[#allocation5 + $0xa0] sm:$0xff]  ;;  %p1041_p2 = scmp.ne.s32.totalorder %s657_s8, %s1040_s9  ;;  %p1046_p4 = scmp.lt.s32.totalorder %s1040_s9, %s1040_s9 }
  0x2b   :  { %v961_v12 = vpack.c.bf16 %v381_v10, %v380_v9  ;;  %v383_v15 = vld [vmem:[#allocation5 + $0xa8] sm:$0xff]  ;;  %958 = vmatprep.subr.bf16.mxu1 %v957_v7  ;;  %928 = vmatpush3.bf16.msra.mxu0 %v925_v3  ;;  %v933_v16 = vpack.c.bf16 %v77_v13, %v76_v11  ;;  %v78_v18 = vld [vmem:[#allocation5 + $0x30] sm:$0xff]  ;;  %v79_v19 = vld [vmem:[#allocation5 + $0x38] sm:$0xff] }
  0x2c   :  { %960 = vmatpush3.bf16.msra.mxu1 %v957_v7  ;;  %930 = vmatprep.subr.bf16.mxu0 %v929_v8  ;;  %v965_v17 = vpack.c.bf16 %v383_v15, %v382_v14  ;;  %v384_v20 = vld [vmem:[#allocation5 + $0xb0] sm:$0xff]  ;;  %v385_v21 = vld [vmem:[#allocation5 + $0xb8] sm:$0xff]  ;;  %v937_v22 = vpack.c.bf16 %v79_v19, %v78_v18  ;;  %v80_v24 = vld [vmem:[#allocation5 + $0x40] sm:$0xff]  ;;  %p1047_p5 = por %p1046_p4, %p1045_p3 }
  0x2d   :  { %962 = vmatprep.subr.bf16.mxu1 %v961_v12  ;;  %v969_v23 = vpack.c.bf16 %v385_v21, %v384_v20  ;;  %v81_v25 = vld [vmem:[#allocation5 + $0x48] sm:$0xff]  ;;  %v40_v26 = vld [vmem:[#allocation2] sm:$0xff]  ;;  %v82_v32 = vld [vmem:[#allocation5 + $0x50] sm:$0xff] }
  0x2e   :  { %v386_v27 = vld [vmem:[#allocation5 + $0xc0] sm:$0xff]  ;;  %v387_v28 = vld [vmem:[#allocation5 + $0xc8] sm:$0xff]  ;;  %797 = vmatprep.mubr.f32.mxu0 %v40_v26  ;;  %v941_v30 = vpack.c.bf16 %v81_v25, %v80_v24  ;;  %v83_v33 = vld [vmem:[#allocation5 + $0x58] sm:$0xff]  ;;  %p1048_p6 = pnand %p1047_p5, %p1041_p2 }
  0x2f   :  { %932 = vmatpush3.bf16.msra.mxu0 %v929_v8  ;;  %v345_v29 = vld [vmem:[#allocation2 + $0x8] sm:$0xff]  ;;  %v973_v31 = vpack.c.bf16 %v387_v28, %v386_v27  ;;  %v388_v34 = vld [vmem:[#allocation5 + $0xd0] sm:$0xff]  ;;  %v389_v35 = vld [vmem:[#allocation5 + $0xd8] sm:$0xff]  ;;  %v945_v36 = vpack.c.bf16 %v83_v33, %v82_v32 }
  0x30   :  { %964 = vmatpush3.bf16.msra.mxu1 %v961_v12  ;;  %934 = vmatprep.subr.bf16.mxu0 %v933_v16  ;;  %v977_v37 = vpack.c.bf16 %v389_v35, %v388_v34  ;;  %v84_v38 = vld [vmem:[#allocation5 + $0x60] sm:$0xff]  ;;  %v85_v39 = vld [vmem:[#allocation5 + $0x68] sm:$0xff]  ;;  %v86_v44 = vld [vmem:[#allocation5 + $0x70] sm:$0xff] }
  0x31   :  { %966 = vmatprep.subr.bf16.mxu1 %v965_v17  ;;  %877 = vmatprep.mubr.f32.mxu1 %v345_v29  ;;  %v390_v40 = vld [vmem:[#allocation5 + $0xe0] sm:$0xff]  ;;  %v391_v41 = vld [vmem:[#allocation5 + $0xe8] sm:$0xff]  ;;  %v949_v42 = vpack.c.bf16 %v85_v39, %v84_v38  ;;  %v87_v45 = vld [vmem:[#allocation5 + $0x78] sm:$0xff] }
  0x32   :  { %v981_v43 = vpack.c.bf16 %v391_v41, %v390_v40  ;;  %v392_v46 = vld [vmem:[#allocation5 + $0xf0] sm:$0xff]  ;;  %v393_v47 = vld [vmem:[#allocation5 + $0xf8] sm:$0xff]  ;;  %v953_v48 = vpack.c.bf16 %v87_v45, %v86_v44  ;;  %v42_v52 = vld [vmem:[#allocation2 + $0x20] sm:$0xff] }
  0x33   :  { %936 = vmatpush3.bf16.msra.mxu0 %v933_v16  ;;  %v985_v49 = vpack.c.bf16 %v393_v47, %v392_v46  ;;  %v41_v50 = vld [vmem:[#allocation2 + $0x10] sm:$0xff]  ;;  %v346_v51 = vld [vmem:[#allocation2 + $0x18] sm:$0xff]  ;;  %v347_v53 = vld [vmem:[#allocation2 + $0x28] sm:$0xff] }
  0x34   :  { %968 = vmatpush3.bf16.msra.mxu1 %v965_v17  ;;  %938 = vmatprep.subr.bf16.mxu0 %v937_v22  ;;  %v43_v54 = vld [vmem:[#allocation2 + $0x30] sm:$0xff]  ;;  %v348_v55 = vld [vmem:[#allocation2 + $0x38] sm:$0xff]  ;;  %v44_v56 = vld [vmem:[#allocation2 + $0x40] sm:$0xff] }
  0x35   :  { %970 = vmatprep.subr.bf16.mxu1 %v969_v23  ;;  %v349_v57 = vld [vmem:[#allocation2 + $0x48] sm:$0xff]  ;;  %v45_v58 = vld [vmem:[#allocation2 + $0x50] sm:$0xff]  ;;  %v350_v59 = vld [vmem:[#allocation2 + $0x58] sm:$0xff] }
  0x36   :  { %v46_v60 = vld [vmem:[#allocation2 + $0x60] sm:$0xff]  ;;  %v351_v61 = vld [vmem:[#allocation2 + $0x68] sm:$0xff]  ;;  %v47_v62 = vld [vmem:[#allocation2 + $0x70] sm:$0xff] }
  0x37   :  { %940 = vmatpush3.bf16.msra.mxu0 %v937_v22  ;;  %v352_v63 = vld [vmem:[#allocation2 + $0x78] sm:$0xff]  ;;  %v48_v0 = vld [vmem:[#allocation2 + $0x80] sm:$0xff]  ;;  %v353_v1 = vld [vmem:[#allocation2 + $0x88] sm:$0xff] }
  0x38   :  { %972 = vmatpush3.bf16.msra.mxu1 %v969_v23  ;;  %942 = vmatprep.subr.bf16.mxu0 %v941_v30  ;;  %v49_v2 = vld [vmem:[#allocation2 + $0x90] sm:$0xff]  ;;  %v354_v3 = vld [vmem:[#allocation2 + $0x98] sm:$0xff]  ;;  %v50_v4 = vld [vmem:[#allocation2 + $0xa0] sm:$0xff] }
  0x39   :  { %974 = vmatprep.subr.bf16.mxu1 %v973_v31  ;;  %v355_v5 = vld [vmem:[#allocation2 + $0xa8] sm:$0xff]  ;;  %v51_v6 = vld [vmem:[#allocation2 + $0xb0] sm:$0xff]  ;;  %v356_v7 = vld [vmem:[#allocation2 + $0xb8] sm:$0xff] }
  0x3a   :  { %v52_v8 = vld [vmem:[#allocation2 + $0xc0] sm:$0xff]  ;;  %v357_v9 = vld [vmem:[#allocation2 + $0xc8] sm:$0xff]  ;;  %v53_v10 = vld [vmem:[#allocation2 + $0xd0] sm:$0xff] }
  0x3b   :  { %944 = vmatpush3.bf16.msra.mxu0 %v941_v30  ;;  %v358_v11 = vld [vmem:[#allocation2 + $0xd8] sm:$0xff]  ;;  %v54_v12 = vld [vmem:[#allocation2 + $0xe0] sm:$0xff]  ;;  %v359_v13 = vld [vmem:[#allocation2 + $0xe8] sm:$0xff] }
  0x3c   :  { %976 = vmatpush3.bf16.msra.mxu1 %v973_v31  ;;  %946 = vmatprep.subr.bf16.mxu0 %v945_v36  ;;  %v55_v14 = vld [vmem:[#allocation2 + $0xf0] sm:$0xff]  ;;  %v360_v15 = vld [vmem:[#allocation2 + $0xf8] sm:$0xff]  ;;  %v56_v16 = vld [vmem:[#allocation2 + $0x100] sm:$0xff] }
  0x3d   :  { %978 = vmatprep.subr.bf16.mxu1 %v977_v37  ;;  %v361_v17 = vld [vmem:[#allocation2 + $0x108] sm:$0xff]  ;;  %v57_v18 = vld [vmem:[#allocation2 + $0x110] sm:$0xff]  ;;  %v362_v19 = vld [vmem:[#allocation2 + $0x118] sm:$0xff] }
  0x3e   :  { %v58_v20 = vld [vmem:[#allocation2 + $0x120] sm:$0xff]  ;;  %v363_v21 = vld [vmem:[#allocation2 + $0x128] sm:$0xff]  ;;  %v59_v22 = vld [vmem:[#allocation2 + $0x130] sm:$0xff] }
  0x3f   :  { %948 = vmatpush3.bf16.msra.mxu0 %v945_v36  ;;  %v364_v23 = vld [vmem:[#allocation2 + $0x138] sm:$0xff]  ;;  %v60_v24 = vld [vmem:[#allocation2 + $0x140] sm:$0xff]  ;;  %v365_v25 = vld [vmem:[#allocation2 + $0x148] sm:$0xff] }
  0x40   :  { %980 = vmatpush3.bf16.msra.mxu1 %v977_v37  ;;  %950 = vmatprep.subr.bf16.mxu0 %v949_v42  ;;  %v61_v26 = vld [vmem:[#allocation2 + $0x150] sm:$0xff]  ;;  %v366_v27 = vld [vmem:[#allocation2 + $0x158] sm:$0xff]  ;;  %v62_v28 = vld [vmem:[#allocation2 + $0x160] sm:$0xff] }
  0x41   :  { %982 = vmatprep.subr.bf16.mxu1 %v981_v43  ;;  %v367_v29 = vld [vmem:[#allocation2 + $0x168] sm:$0xff]  ;;  %v63_v30 = vld [vmem:[#allocation2 + $0x170] sm:$0xff]  ;;  %v368_v31 = vld [vmem:[#allocation2 + $0x178] sm:$0xff] }
  0x42   :  { %v64_v32 = vld [vmem:[#allocation2 + $0x180] sm:$0xff]  ;;  %v369_v33 = vld [vmem:[#allocation2 + $0x188] sm:$0xff]  ;;  %v65_v34 = vld [vmem:[#allocation2 + $0x190] sm:$0xff] }
  0x43   :  { %952 = vmatpush3.bf16.msra.mxu0 %v949_v42  ;;  %v370_v35 = vld [vmem:[#allocation2 + $0x198] sm:$0xff]  ;;  %v66_v36 = vld [vmem:[#allocation2 + $0x1a0] sm:$0xff]  ;;  %v371_v37 = vld [vmem:[#allocation2 + $0x1a8] sm:$0xff] }
  0x44   :  { %984 = vmatpush3.bf16.msra.mxu1 %v981_v43  ;;  %954 = vmatprep.subr.bf16.mxu0 %v953_v48  ;;  %v67_v38 = vld [vmem:[#allocation2 + $0x1b0] sm:$0xff]  ;;  %v372_v39 = vld [vmem:[#allocation2 + $0x1b8] sm:$0xff]  ;;  %v68_v40 = vld [vmem:[#allocation2 + $0x1c0] sm:$0xff] }
  0x45   :  { %986 = vmatprep.subr.bf16.mxu1 %v985_v49  ;;  %v373_v41 = vld [vmem:[#allocation2 + $0x1c8] sm:$0xff]  ;;  %v69_v42 = vld [vmem:[#allocation2 + $0x1d0] sm:$0xff]  ;;  %v374_v43 = vld [vmem:[#allocation2 + $0x1d8] sm:$0xff] }
  0x46   :  { %v70_v44 = vld [vmem:[#allocation2 + $0x1e0] sm:$0xff]  ;;  %v375_v45 = vld [vmem:[#allocation2 + $0x1e8] sm:$0xff]  ;;  %v71_v46 = vld [vmem:[#allocation2 + $0x1f0] sm:$0xff] }
  0x47   :  { %956 = vmatpush3.bf16.msra.mxu0 %v953_v48  ;;  %v376_v47 = vld [vmem:[#allocation2 + $0x1f8] sm:$0xff] }
  0x48   :  { %988 = vmatpush3.bf16.msra.mxu1 %v985_v49 }
  0x4a   :  { %798 = vmatmul.mubr.f32.vlgmr.msra.gmra.mrb[0].mxu0 %v41_v50 }
  0x4b   :  { %878 = vmatmul.mubr.f32.vlgmr.msra.gmra.mrb[0].mxu1 %v346_v51  ;;  %800 = vmatprep.mubr.f32.mxu0 %v42_v52 }
  0x4c   :  { %880 = vmatprep.mubr.f32.mxu1 %v347_v53 }
  0x4e   :  { %801 = vmatmul.mubr.f32.gmra.mrb[2].mxu0 %v43_v54 }
  0x4f   :  { %881 = vmatmul.mubr.f32.gmra.mrb[2].mxu1 %v348_v55  ;;  %803 = vmatprep.mubr.f32.mxu0 %v44_v56 }
  0x50   :  { %883 = vmatprep.mubr.f32.mxu1 %v349_v57 }
  0x52   :  { %804 = vmatmul.mubr.f32.gmra.mrb[4].mxu0 %v45_v58 }
  0x53   :  { %884 = vmatmul.mubr.f32.gmra.mrb[4].mxu1 %v350_v59  ;;  %806 = vmatprep.mubr.f32.mxu0 %v46_v60 }
  0x54   :  { %886 = vmatprep.mubr.f32.mxu1 %v351_v61 }
  0x56   :  { %807 = vmatmul.mubr.f32.gmra.mrb[6].mxu0 %v47_v62 }
  0x57   :  { %887 = vmatmul.mubr.f32.gmra.mrb[6].mxu1 %v352_v63  ;;  %809 = vmatprep.mubr.f32.mxu0 %v48_v0 }
  0x58   :  { %889 = vmatprep.mubr.f32.mxu1 %v353_v1 }
  0x5a   :  { %810 = vmatmul.mubr.f32.gmra.mrb[8].mxu0 %v49_v2 }
  0x5b   :  { %890 = vmatmul.mubr.f32.gmra.mrb[8].mxu1 %v354_v3  ;;  %812 = vmatprep.mubr.f32.mxu0 %v50_v4 }
  0x5c   :  { %892 = vmatprep.mubr.f32.mxu1 %v355_v5 }
  0x5e   :  { %813 = vmatmul.mubr.f32.gmra.mrb[10].mxu0 %v51_v6 }
  0x5f   :  { %893 = vmatmul.mubr.f32.gmra.mrb[10].mxu1 %v356_v7  ;;  %815 = vmatprep.mubr.f32.mxu0 %v52_v8 }
  0x60   :  { %895 = vmatprep.mubr.f32.mxu1 %v357_v9 }
  0x62   :  { %816 = vmatmul.mubr.f32.gmra.mrb[12].mxu0 %v53_v10 }
  0x63   :  { %896 = vmatmul.mubr.f32.gmra.mrb[12].mxu1 %v358_v11  ;;  %818 = vmatprep.mubr.f32.mxu0 %v54_v12 }
  0x64   :  { %898 = vmatprep.mubr.f32.mxu1 %v359_v13 }
  0x66   :  { %819 = vmatmul.mubr.f32.gmra.mrb[14].mxu0 %v55_v14 }
  0x67   :  { %899 = vmatmul.mubr.f32.gmra.mrb[14].mxu1 %v360_v15  ;;  %821 = vmatprep.mubr.f32.mxu0 %v56_v16 }
  0x68   :  { %901 = vmatprep.mubr.f32.mxu1 %v361_v17 }
  0x6a   :  { %822 = vmatmul.mubr.f32.gmra.mrb[16].mxu0 %v57_v18 }
  0x6b   :  { %902 = vmatmul.mubr.f32.gmra.mrb[16].mxu1 %v362_v19  ;;  %824 = vmatprep.mubr.f32.mxu0 %v58_v20 }
  0x6c   :  { %904 = vmatprep.mubr.f32.mxu1 %v363_v21 }
  0x6e   :  { %825 = vmatmul.mubr.f32.gmra.mrb[18].mxu0 %v59_v22 }
  0x6f   :  { %905 = vmatmul.mubr.f32.gmra.mrb[18].mxu1 %v364_v23  ;;  %827 = vmatprep.mubr.f32.mxu0 %v60_v24 }
  0x70   :  { %907 = vmatprep.mubr.f32.mxu1 %v365_v25 }
  0x72   :  { %828 = vmatmul.mubr.f32.gmra.mrb[20].mxu0 %v61_v26 }
  0x73   :  { %908 = vmatmul.mubr.f32.gmra.mrb[20].mxu1 %v366_v27  ;;  %830 = vmatprep.mubr.f32.mxu0 %v62_v28 }
  0x74   :  { %910 = vmatprep.mubr.f32.mxu1 %v367_v29 }
  0x76   :  { %831 = vmatmul.mubr.f32.gmra.mrb[22].mxu0 %v63_v30 }
  0x77   :  { %911 = vmatmul.mubr.f32.gmra.mrb[22].mxu1 %v368_v31  ;;  %833 = vmatprep.mubr.f32.mxu0 %v64_v32 }
  0x78   :  { %913 = vmatprep.mubr.f32.mxu1 %v369_v33 }
  0x7a   :  { %834 = vmatmul.mubr.f32.gmra.mrb[24].mxu0 %v65_v34 }
  0x7b   :  { %914 = vmatmul.mubr.f32.gmra.mrb[24].mxu1 %v370_v35  ;;  %836 = vmatprep.mubr.f32.mxu0 %v66_v36 }
  0x7c   :  { %916 = vmatprep.mubr.f32.mxu1 %v371_v37 }
  0x7e   :  { %837 = vmatmul.mubr.f32.gmra.mrb[26].mxu0 %v67_v38 }
  0x7f   :  { %917 = vmatmul.mubr.f32.gmra.mrb[26].mxu1 %v372_v39  ;;  %839 = vmatprep.mubr.f32.mxu0 %v68_v40 }
  0x80   :  { %919 = vmatprep.mubr.f32.mxu1 %v373_v41 }
  0x82   :  { %840 = vmatmul.mubr.f32.gmra.mrb[28].mxu0 %v69_v42 }
  0x83   :  { %920 = vmatmul.mubr.f32.gmra.mrb[28].mxu1 %v374_v43  ;;  %842 = vmatprep.mubr.f32.mxu0 %v70_v44 }
  0x84   :  { %922 = vmatprep.mubr.f32.mxu1 %v375_v45 }
  0x86   :  { %843 = vmatmul.mubr.f32.gmra.mrb[30].mxu0 %v71_v46 }
  0x87   :  { %923 = vmatmul.mubr.f32.gmra.mrb[30].mxu1 %v376_v47 }
 0x11d   :  { %v799_v48 = vpop.f32.mrb[0].mxu0 }
 0x11e   :  { %314 = vst [vmem:[#allocation7 + $0x10] sm:$0xff] %v799_v48  ;;  %v879_v49 = vpop.f32.mrb[0].mxu1  ;;  %v154_v50 = vpop.f32.mrb[1].mxu0 }
 0x11f   :  { %620 = vst [vmem:[#allocation7 + $0x18] sm:$0xff] %v879_v49  ;;  %313 = vst [vmem:[#allocation7] sm:$0xff] %v154_v50  ;;  %v460_v51 = vpop.f32.mrb[1].mxu1 }
 0x120   :  { %619 = vst [vmem:[#allocation7 + $0x8] sm:$0xff] %v460_v51 }
 0x121   :  { %v802_v52 = vpop.f32.mrb[2].mxu0 }
 0x122   :  { %316 = vst [vmem:[#allocation7 + $0x30] sm:$0xff] %v802_v52  ;;  %v882_v53 = vpop.f32.mrb[2].mxu1  ;;  %v164_v54 = vpop.f32.mrb[3].mxu0 }
 0x123   :  { %622 = vst [vmem:[#allocation7 + $0x38] sm:$0xff] %v882_v53  ;;  %315 = vst [vmem:[#allocation7 + $0x20] sm:$0xff] %v164_v54  ;;  %v470_v55 = vpop.f32.mrb[3].mxu1 }
 0x124   :  { %621 = vst [vmem:[#allocation7 + $0x28] sm:$0xff] %v470_v55 }
 0x125   :  { %v805_v56 = vpop.f32.mrb[4].mxu0 }
 0x126   :  { %318 = vst [vmem:[#allocation7 + $0x50] sm:$0xff] %v805_v56  ;;  %v885_v57 = vpop.f32.mrb[4].mxu1  ;;  %v174_v58 = vpop.f32.mrb[5].mxu0 }
 0x127   :  { %624 = vst [vmem:[#allocation7 + $0x58] sm:$0xff] %v885_v57  ;;  %317 = vst [vmem:[#allocation7 + $0x40] sm:$0xff] %v174_v58  ;;  %v480_v59 = vpop.f32.mrb[5].mxu1 }
 0x128   :  { %623 = vst [vmem:[#allocation7 + $0x48] sm:$0xff] %v480_v59 }
 0x129   :  { %v808_v60 = vpop.f32.mrb[6].mxu0 }
 0x12a   :  { %320 = vst [vmem:[#allocation7 + $0x70] sm:$0xff] %v808_v60  ;;  %v888_v61 = vpop.f32.mrb[6].mxu1  ;;  %v184_v62 = vpop.f32.mrb[7].mxu0 }
 0x12b   :  { %626 = vst [vmem:[#allocation7 + $0x78] sm:$0xff] %v888_v61  ;;  %319 = vst [vmem:[#allocation7 + $0x60] sm:$0xff] %v184_v62  ;;  %v490_v63 = vpop.f32.mrb[7].mxu1 }
 0x12c   :  { %625 = vst [vmem:[#allocation7 + $0x68] sm:$0xff] %v490_v63 }
 0x12d   :  { %v811_v0 = vpop.f32.mrb[8].mxu0 }
 0x12e   :  { %322 = vst [vmem:[#allocation7 + $0x90] sm:$0xff] %v811_v0  ;;  %v891_v1 = vpop.f32.mrb[8].mxu1  ;;  %v194_v2 = vpop.f32.mrb[9].mxu0 }
 0x12f   :  { %628 = vst [vmem:[#allocation7 + $0x98] sm:$0xff] %v891_v1  ;;  %321 = vst [vmem:[#allocation7 + $0x80] sm:$0xff] %v194_v2  ;;  %v500_v3 = vpop.f32.mrb[9].mxu1 }
 0x130   :  { %627 = vst [vmem:[#allocation7 + $0x88] sm:$0xff] %v500_v3 }
 0x131   :  { %v814_v4 = vpop.f32.mrb[10].mxu0 }
 0x132   :  { %324 = vst [vmem:[#allocation7 + $0xb0] sm:$0xff] %v814_v4  ;;  %v894_v5 = vpop.f32.mrb[10].mxu1  ;;  %v204_v6 = vpop.f32.mrb[11].mxu0 }
 0x133   :  { %630 = vst [vmem:[#allocation7 + $0xb8] sm:$0xff] %v894_v5  ;;  %323 = vst [vmem:[#allocation7 + $0xa0] sm:$0xff] %v204_v6  ;;  %v510_v7 = vpop.f32.mrb[11].mxu1 }
 0x134   :  { %629 = vst [vmem:[#allocation7 + $0xa8] sm:$0xff] %v510_v7 }
 0x135   :  { %v817_v8 = vpop.f32.mrb[12].mxu0 }
 0x136   :  { %326 = vst [vmem:[#allocation7 + $0xd0] sm:$0xff] %v817_v8  ;;  %v897_v9 = vpop.f32.mrb[12].mxu1  ;;  %v214_v10 = vpop.f32.mrb[13].mxu0 }
 0x137   :  { %632 = vst [vmem:[#allocation7 + $0xd8] sm:$0xff] %v897_v9  ;;  %325 = vst [vmem:[#allocation7 + $0xc0] sm:$0xff] %v214_v10  ;;  %v520_v11 = vpop.f32.mrb[13].mxu1 }
 0x138   :  { %631 = vst [vmem:[#allocation7 + $0xc8] sm:$0xff] %v520_v11 }
 0x139   :  { %v820_v12 = vpop.f32.mrb[14].mxu0 }
 0x13a   :  { %328 = vst [vmem:[#allocation7 + $0xf0] sm:$0xff] %v820_v12  ;;  %v900_v13 = vpop.f32.mrb[14].mxu1  ;;  %v224_v14 = vpop.f32.mrb[15].mxu0 }
 0x13b   :  { %634 = vst [vmem:[#allocation7 + $0xf8] sm:$0xff] %v900_v13  ;;  %327 = vst [vmem:[#allocation7 + $0xe0] sm:$0xff] %v224_v14  ;;  %v530_v15 = vpop.f32.mrb[15].mxu1 }
 0x13c   :  { %633 = vst [vmem:[#allocation7 + $0xe8] sm:$0xff] %v530_v15 }
 0x13d   :  { %v823_v16 = vpop.f32.mrb[16].mxu0 }
 0x13e   :  { %330 = vst [vmem:[#allocation7 + $0x110] sm:$0xff] %v823_v16  ;;  %v903_v17 = vpop.f32.mrb[16].mxu1  ;;  %v234_v18 = vpop.f32.mrb[17].mxu0 }
 0x13f   :  { %636 = vst [vmem:[#allocation7 + $0x118] sm:$0xff] %v903_v17  ;;  %329 = vst [vmem:[#allocation7 + $0x100] sm:$0xff] %v234_v18  ;;  %v540_v19 = vpop.f32.mrb[17].mxu1 }
 0x140   :  { %635 = vst [vmem:[#allocation7 + $0x108] sm:$0xff] %v540_v19 }
 0x141   :  { %v826_v20 = vpop.f32.mrb[18].mxu0 }
 0x142   :  { %332 = vst [vmem:[#allocation7 + $0x130] sm:$0xff] %v826_v20  ;;  %v906_v21 = vpop.f32.mrb[18].mxu1  ;;  %v244_v22 = vpop.f32.mrb[19].mxu0 }
 0x143   :  { %638 = vst [vmem:[#allocation7 + $0x138] sm:$0xff] %v906_v21  ;;  %331 = vst [vmem:[#allocation7 + $0x120] sm:$0xff] %v244_v22  ;;  %v550_v23 = vpop.f32.mrb[19].mxu1 }
 0x144   :  { %637 = vst [vmem:[#allocation7 + $0x128] sm:$0xff] %v550_v23 }
 0x145   :  { %v829_v24 = vpop.f32.mrb[20].mxu0 }
 0x146   :  { %334 = vst [vmem:[#allocation7 + $0x150] sm:$0xff] %v829_v24  ;;  %v909_v25 = vpop.f32.mrb[20].mxu1  ;;  %v254_v26 = vpop.f32.mrb[21].mxu0 }
 0x147   :  { %640 = vst [vmem:[#allocation7 + $0x158] sm:$0xff] %v909_v25  ;;  %333 = vst [vmem:[#allocation7 + $0x140] sm:$0xff] %v254_v26  ;;  %v560_v27 = vpop.f32.mrb[21].mxu1 }
 0x148   :  { %639 = vst [vmem:[#allocation7 + $0x148] sm:$0xff] %v560_v27 }
 0x149   :  { %v832_v28 = vpop.f32.mrb[22].mxu0 }
 0x14a   :  { %336 = vst [vmem:[#allocation7 + $0x170] sm:$0xff] %v832_v28  ;;  %v912_v29 = vpop.f32.mrb[22].mxu1  ;;  %v264_v30 = vpop.f32.mrb[23].mxu0 }
 0x14b   :  { %642 = vst [vmem:[#allocation7 + $0x178] sm:$0xff] %v912_v29  ;;  %335 = vst [vmem:[#allocation7 + $0x160] sm:$0xff] %v264_v30  ;;  %v570_v31 = vpop.f32.mrb[23].mxu1 }
 0x14c   :  { %641 = vst [vmem:[#allocation7 + $0x168] sm:$0xff] %v570_v31 }
 0x14d   :  { %v835_v32 = vpop.f32.mrb[24].mxu0 }
 0x14e   :  { %338 = vst [vmem:[#allocation7 + $0x190] sm:$0xff] %v835_v32  ;;  %v915_v33 = vpop.f32.mrb[24].mxu1  ;;  %v274_v34 = vpop.f32.mrb[25].mxu0 }
 0x14f   :  { %644 = vst [vmem:[#allocation7 + $0x198] sm:$0xff] %v915_v33  ;;  %337 = vst [vmem:[#allocation7 + $0x180] sm:$0xff] %v274_v34  ;;  %v580_v35 = vpop.f32.mrb[25].mxu1 }
 0x150   :  { %643 = vst [vmem:[#allocation7 + $0x188] sm:$0xff] %v580_v35 }
 0x151   :  { %v838_v36 = vpop.f32.mrb[26].mxu0 }
 0x152   :  { %340 = vst [vmem:[#allocation7 + $0x1b0] sm:$0xff] %v838_v36  ;;  %v918_v37 = vpop.f32.mrb[26].mxu1  ;;  %v284_v38 = vpop.f32.mrb[27].mxu0 }
 0x153   :  { %646 = vst [vmem:[#allocation7 + $0x1b8] sm:$0xff] %v918_v37  ;;  %339 = vst [vmem:[#allocation7 + $0x1a0] sm:$0xff] %v284_v38  ;;  %v590_v39 = vpop.f32.mrb[27].mxu1 }
 0x154   :  { %645 = vst [vmem:[#allocation7 + $0x1a8] sm:$0xff] %v590_v39 }
 0x155   :  { %v841_v40 = vpop.f32.mrb[28].mxu0 }
 0x156   :  { %342 = vst [vmem:[#allocation7 + $0x1d0] sm:$0xff] %v841_v40  ;;  %v921_v41 = vpop.f32.mrb[28].mxu1  ;;  %v294_v42 = vpop.f32.mrb[29].mxu0 }
 0x157   :  { %648 = vst [vmem:[#allocation7 + $0x1d8] sm:$0xff] %v921_v41  ;;  %341 = vst [vmem:[#allocation7 + $0x1c0] sm:$0xff] %v294_v42  ;;  %v600_v43 = vpop.f32.mrb[29].mxu1 }
 0x158   :  { %647 = vst [vmem:[#allocation7 + $0x1c8] sm:$0xff] %v600_v43 }
 0x159   :  { %v844_v44 = vpop.f32.mrb[30].mxu0 }
 0x15a   :  { %344 = vst [vmem:[#allocation7 + $0x1f0] sm:$0xff] %v844_v44  ;;  %v924_v45 = vpop.f32.mrb[30].mxu1  ;;  %v304_v46 = vpop.f32.mrb[31].mxu0 }
 0x15b   :  { %650 = vst [vmem:[#allocation7 + $0x1f8] sm:$0xff] %v924_v45  ;;  %343 = vst [vmem:[#allocation7 + $0x1e0] sm:$0xff] %v304_v46  ;;  %v610_v47 = vpop.f32.mrb[31].mxu1 }
 0x15c   :  { %649 = vst [vmem:[#allocation7 + $0x1e8] sm:$0xff] %v610_v47 }
 0x15d   :  { %1051 = shalt.err (!%p1048_p6)
}
 0x15e   :  { %s1052_s12 = scalar_lea.hbm %s1134_s2, 8192 }
 0x15f   :  { %p1053_p7 = scmp.ne.s32.totalorder %s1134_s2, %s1052_s12  ;;  %p1056_p8 = scmp.lt.u32.totalorder %s1052_s12, %s1134_s2 }
 0x161   :  { %p1058_p9 = pnand %p1056_p8, %p1053_p7 }
 0x163   :  { %1061 = shalt.err (!%p1058_p9)
}
 0x164   :  { %662 = dma.vmem_to_hbm [thread:$0]  %s657_s8, 8192, %s1134_s2, [#allocation4], %s1069_s19, %s1069_s19, %s1070_s20  }
 0x165   :  { %1066 = dma.done.wait [#allocation4], 8192  }
 0x166   :  { %1067 = vsyncadd [#allocation4], 4294959104 }
 0x167   :  { %666 = vsyncpa [#allocation3], 1 }
 0x168   :  { %667 = vsyncpa [#allocation6], 1 }
 0x169   :  { %668 = vsyncpa [#allocation4], 1 }

</bundles_post_ra>
